<compile_context>
chip_gen: v6e
topology: v6e:2x2x1
jax: 0.10.0
libtpu: 0.0.40
codegen_flags: <defaults>
</compile_context>

<pallas_src>
import jax
import jax.numpy as jnp
from jax.experimental import pallas as pl
from jax.experimental.pallas import tpu as pltpu


def _copy_kernel(x_ref, o_ref):
    # nn.Flatten has no arithmetic: stream one lane-dense tile through VMEM.
    o_ref[...] = x_ref[...]


def _flat_dim(shape) -> int:
    f = 1
    for d in shape:
        f *= d
    return f


def _compiler_params(n_axes: int, block_bytes: int) -> pltpu.CompilerParams:
    kwargs = dict(dimension_semantics=("parallel",) * n_axes)
    # in + out, double-buffered => ~4 blocks resident in scoped VMEM.
    need = 4 * block_bytes
    if need > 12 * (1 << 20):  # only override when the default limit is tight
        kwargs["vmem_limit_bytes"] = int(need * 1.5)
    return pltpu.CompilerParams(**kwargs)


def flatten_extractor_forward(
    obs: jax.Array,
    *,
    min_kernel_bytes: int = 1 << 20,     # below this, a free reshape view wins
    target_block_bytes: int = 2 << 20,   # ~2 MiB blocks: safe on v5e/v6e/v7x defaults
    force_kernel: bool = False,          # force the materializing Pallas copy
) -> jax.Array:
    """Equivalent of FlattenExtractor.forward(observations): (B, ...) -> (B, F)."""
    B = obs.shape[0]
    F = _flat_dim(obs.shape[1:])
    T = B * F
    itemsize = jnp.dtype(obs.dtype).itemsize
    nbytes = T * itemsize

    # Row-major collapse -- a free view, identical to torch.nn.Flatten on a
    # contiguous tensor.
    x2d = obs.reshape(B, F)

    # (1) Short-circuit: small slab (launch overhead dominates a 0-FLOP,
    #     HBM-bound op) -> just return the view and let downstream ops fuse it.
    if not force_kernel and nbytes < min_kernel_bytes:
        return x2d

    cost = pl.CostEstimate(flops=0, transcendentals=0, bytes_accessed=2 * nbytes)

    # (2) Lane-dense fast path: largest multiple of 128 that divides T.
    lane_tile = 0
    for cand in (4096, 2048, 1024, 512, 256, 128):
        if T % cand == 0:
            lane_tile = cand
            break

    if lane_tile:
        rows = T // lane_tile
        # Rows per block: multiple of 8 sized to ~target_block_bytes, or full extent.
        row_tile = max(8, (target_block_bytes // (lane_tile * itemsize)) // 8 * 8)
        if rows <= row_tile:
            row_tile = rows  # full extent is always legal
        block_bytes = row_tile * lane_tile * itemsize
        xs = x2d.reshape(rows, lane_tile)  # free view, fully lane-dense
        out = pl.pallas_call(
            _copy_kernel,
            out_shape=jax.ShapeDtypeStruct((rows, lane_tile), xs.dtype),
            grid=(pl.cdiv(rows, row_tile),),
            in_specs=[pl.BlockSpec((row_tile, lane_tile), lambda i: (i, 0))],
            out_specs=pl.BlockSpec((row_tile, lane_tile), lambda i: (i, 0)),
            compiler_params=_compiler_params(1, block_bytes),
            cost_estimate=cost,
        )(xs)
        return out.reshape(B, F)  # free view back to (B, F)

    # (3) Fallback (T not a multiple of 128): tile the (B, F) slab directly.
    #     Ragged edges are handled by Pallas' masked boundary blocks (pl.cdiv
    #     grid); no wrapper-side pad or slice.  Widen f_tile when B is small so
    #     blocks stay ~target_block_bytes instead of degenerating to B*4 KiB.
    b_tile = B if B <= 256 else 256  # multiple of 8, or full extent
    if F <= 128:
        f_tile = F  # full extent (lane-sparse masked stores are unavoidable here)
    else:
        desired = max(128, (target_block_bytes // (b_tile * itemsize)) // 128 * 128)
        f_tile = F if desired >= F else desired  # multiple of 128, or full extent
    block_bytes = b_tile * f_tile * itemsize
    out = pl.pallas_call(
        _copy_kernel,
        out_shape=jax.ShapeDtypeStruct((B, F), x2d.dtype),
        grid=(pl.cdiv(B, b_tile), pl.cdiv(F, f_tile)),
        in_specs=[pl.BlockSpec((b_tile, f_tile), lambda i, j: (i, j))],
        out_specs=pl.BlockSpec((b_tile, f_tile), lambda i, j: (i, j)),
        compiler_params=_compiler_params(2, block_bytes),
        cost_estimate=cost,
    )(x2d)
    return out


if __name__ == "__main__":
    key = jax.random.PRNGKey(0)
    k1, k2, k3, k4 = jax.random.split(key, 4)

    # 1) Image-like observation (NCHW), small: default path short-circuits to a
    #    free reshape view (no kernel launch).
    x = jax.random.normal(k1, (2, 4, 16, 16), dtype=jnp.float32)
    ref_x = x.reshape(2, -1)
    view = jax.block_until_ready(flatten_extractor_forward(x))
    assert view.shape == (2, 4 * 16 * 16) and view.dtype == x.dtype
    assert bool(jnp.all(view == ref_x))

    # 2) Same observation through the Pallas lane-dense path (forced).
    feats = jax.block_until_ready(flatten_extractor_forward(x, force_kernel=True))
    assert feats.shape == (2, 4 * 16 * 16) and feats.dtype == x.dtype
    assert bool(jnp.all(feats == ref_x))

    # 3) Lane-dense path with a multi-step grid and a masked boundary block
    #    (rows = 27, row_tile = 16).
    z = jax.random.normal(k2, (16, 3, 24, 24), dtype=jnp.float32)  # T = 27 * 1024
    feats_z = jax.block_until_ready(
        flatten_extractor_forward(z, force_kernel=True, target_block_bytes=64 * 1024))
    assert feats_z.shape == (16, 3 * 24 * 24)
    assert bool(jnp.all(feats_z == z.reshape(16, -1)))

    # 4) Ragged fallback: element count not a multiple of 128, tiny F.
    y = jax.random.normal(k3, (3, 5, 7), dtype=jnp.float32)
    feats_y = jax.block_until_ready(flatten_extractor_forward(y, force_kernel=True))
    assert feats_y.shape == (3, 35)
    assert bool(jnp.all(feats_y == y.reshape(3, -1)))

    # 5) Ragged fallback with a multi-step lane grid (F = 231, f_tile = 128).
    w = jax.random.normal(k4, (2, 7, 33), dtype=jnp.float32)
    feats_w = jax.block_until_ready(
        flatten_extractor_forward(w, force_kernel=True, target_block_bytes=1024))
    assert feats_w.shape == (2, 231)
    assert bool(jnp.all(feats_w == w.reshape(2, -1)))

    print("KERNEL_OK")
</pallas_src>

<mosaic_0001>
module attributes {stable_mosaic.version = 11 : i64} {
  func.func @_copy_kernel(%arg0: i32, %arg1: memref<1x2048xf32, #tpu.memory_space<vmem>>, %arg2: memref<1x2048xf32, #tpu.memory_space<vmem>>) attributes {dimension_semantics = [#tpu.dimension_semantics<parallel>], iteration_bounds = array<i64: 1>, scalar_prefetch = 0 : i64, scratch_operands = 0 : i64, tpu.core_type = #tpu.core_type<tc>, window_params = [{transform_indices = @transform_0, window_bounds = array<i64: 1, 2048>}, {transform_indices = @transform_1, window_bounds = array<i64: 1, 2048>}]} {
    %c0 = arith.constant 0 : index
    %c0_0 = arith.constant 0 : index
    %0 = vector.load %arg1[%c0, %c0_0] : memref<1x2048xf32, #tpu.memory_space<vmem>>, vector<1x2048xf32>
    %c0_1 = arith.constant 0 : index
    %c0_2 = arith.constant 0 : index
    %1 = vector.load %arg2[%c0_1, %c0_2] : memref<1x2048xf32, #tpu.memory_space<vmem>>, vector<1x2048xf32>
    tpu.vector_store %arg2[%c0_1, %c0_2], %0 {strides = array<i32>} : memref<1x2048xf32, #tpu.memory_space<vmem>>, vector<1x2048xf32>,
    return
  }
  func.func @transform_0(%arg0: i32) -> (i32, i32) {
    %c0_i32 = arith.constant 0 : i32
    %c0_i32_0 = arith.constant 0 : i32
    return %arg0, %c0_i32 : i32, i32
  }
  func.func @transform_1(%arg0: i32) -> (i32, i32) {
    %c0_i32 = arith.constant 0 : i32
    %c0_i32_0 = arith.constant 0 : i32
    return %arg0, %c0_i32 : i32, i32
  }
}

</mosaic_0001>

<bundles_post_ra>
// kernel: tpu_custom_call.1
= control target key start
LH: loop header
LB: loop body
LE: loop exit
PB: predicated region body
PF: predicated region fallthrough
CT: control target
= control target key end

     0   :  { %6 = vsyncpa [#allocation3], 0  ;;  %s104_s0 = inlined_call_operand.hbm [shape: f32[1,2048], index: 0, kind: input, shape index: {}]   ;;  %s105_s1 = inlined_call_operand.hbm [shape: f32[1,2048], index: 1, kind: output, shape index: {}]  }
   0x1   :  { %7 = vsyncpa [#allocation4], 0  ;;  %s86_s6 = smov [#allocation2]  }
   0x2   :  { %s14_s7 = sshll.u32 %s86_s6, 4  ;;  %s15_s7 = int_to_ptr.vmem [resolvable:$true] %s14_s7 }
   0x3   :  { %s50_s8 = scalar_lea.vmem %s15_s7, 256  ;;  %p55_p1 = scmp.lt.s32.totalorder %s15_s7, %s15_s7 }
   0x4   :  { %p51_p0 = scmp.ne.s32.totalorder %s15_s7, %s50_s8  ;;  %p56_p2 = scmp.lt.s32.totalorder %s50_s8, %s50_s8 }
   0x6   :  { %p57_p3 = por %p56_p2, %p55_p1 }
   0x8   :  { %p58_p4 = pnand %p57_p3, %p51_p0 }
   0xa   :  { %61 = shalt.err (!%p58_p4)
}
   0xb   :  { %17 = dma.hbm_to_vmem [thread:$0]  %s104_s0, 256, %s15_s7, [#allocation3]  }
   0xc   :  { %82 = dma.done.wait [#allocation3], 256  }
   0xd   :  { %83 = vsyncadd [#allocation3], 4294967040  ;;  %s87_s11 = smov [#allocation5]   ;;  %v21_v0 = vld [vmem:[#allocation2] sm:$0xff]  ;;  %v22_v1 = vld [vmem:[#allocation2 + $0x8] sm:$0xff] }
   0xe   :  { %s31_s12 = sshll.u32 %s87_s11, 4  ;;  %23 = vst [vmem:[#allocation5] sm:$0xff] %v21_v0  ;;  %24 = vst [vmem:[#allocation5 + $0x8] sm:$0xff] %v22_v1  ;;  %s32_s12 = int_to_ptr.vmem [resolvable:$true] %s31_s12 }
   0xf   :  { %s62_s13 = scalar_lea.vmem %s32_s12, 256  ;;  %p67_p6 = scmp.lt.s32.totalorder %s32_s12, %s32_s12 }
  0x10   :  { %p63_p5 = scmp.ne.s32.totalorder %s32_s12, %s62_s13  ;;  %p68_p7 = scmp.lt.s32.totalorder %s62_s13, %s62_s13 }
  0x12   :  { %p69_p8 = por %p68_p7, %p67_p6 }
  0x14   :  { %p70_p9 = pnand %p69_p8, %p63_p5 }
  0x16   :  { %73 = shalt.err (!%p70_p9)
}
  0x17   :  { %34 = dma.vmem_to_hbm [thread:$0]  %s32_s12, 256, %s105_s1, [#allocation4]  }
  0x18   :  { %84 = dma.done.wait [#allocation4], 256  }
  0x19   :  { %85 = vsyncadd [#allocation4], 4294967040 }
  0x1a   :  { %38 = vsyncpa [#allocation3], 1 }
  0x1b   :  { %39 = vsyncpa [#allocation4], 1 }

</bundles_post_ra>
